<compile_context>
chip_gen: v7x
topology: tpu7x:2x2x1
jax: 0.10.0
libtpu: 0.0.40
codegen_flags: <defaults>
</compile_context>

<pallas_src>
import functools

import jax
import jax.numpy as jnp
from jax import lax
from jax.experimental import pallas as pl
from jax.experimental.pallas import tpu as pltpu

NUM_RELATIONS = 2
NUM_BASES = 2
LATENT_DIM = (32, 32, 32, 32)        # 4 RGCN layers
NUM_LAYERS = len(LATENT_DIM)
HIDDEN = 32                          # all latent dims are equal
CONCAT_DIM = NUM_LAYERS * HIDDEN     # 128
HEAD_IN = 2 * CONCAT_DIM             # 256 (side_features=False)
HEAD_HID = 128
CLASS_VALUES = 2                     # regression=False -> lin2: 128 -> 2
LANE = 128
SUBLANE = 8


def _round_up(v, m):
    return ((v + m - 1) // m) * m


# ---------------------------------------------------------------------------
# Fused Pallas kernel: 4 RGCN layers + readout + MLP head, all in VMEM,
# node axis on lanes throughout.
# ---------------------------------------------------------------------------
def _igmc_fused_kernel(msgs0_ref, adjT_ref, w1_ref, w2_ref, w3_ref, bias_ref,
                       users_ref, items_ref, lin1w_ref, lin1b_ref,
                       lin2w_ref, lin2b_ref, out_ref, concat_ref):
    """Whole IGMC forward in transposed ([feat, node]) layout.

    layer l:  msgs_T = W_all_T_l @ h_T                       [96, N]  (one wide matmul)
              agg_T  = sum_r msgs_T[r*32:(r+1)*32] @ A_r_T   [32, N]  (N on lane axis)
              h_T    = tanh(msgs_T[64:96] + agg_T + b_l)     -> concat scratch row l*32
    readout:  one-hot built in-kernel from indices; gather matmul contracts the
              node axes -> g [B_pad, 256] row layout.
    head:     out = relu(g @ W1 + b1) @ W2_pad + b2_pad      [B_pad, 128] lane-dense.
    """
    d = HIDDEN
    n_pad = adjT_ref.shape[1]
    w_refs = (None, w1_ref, w2_ref, w3_ref)

    h_bf = None
    for l in range(NUM_LAYERS):                               # static unroll, 4 layers
        if l == 0:
            msgs = msgs0_ref[...]                             # [96, N] f32 (precomputed)
        else:
            msgs = jnp.dot(w_refs[l][...], h_bf,
                           preferred_element_type=jnp.float32)  # [96, 32]@[32, N]
        agg = None
        for r in range(NUM_RELATIONS):                        # aligned sublane slices
            msg_r = msgs[r * d:(r + 1) * d, :].astype(jnp.bfloat16)        # [32, N]
            adj_r = adjT_ref[r * n_pad:(r + 1) * n_pad, :]                 # [N, N]
            part = jnp.dot(msg_r, adj_r, preferred_element_type=jnp.float32)
            agg = part if agg is None else agg + part                      # [32, N] f32
        root = msgs[NUM_RELATIONS * d:(NUM_RELATIONS + 1) * d, :]          # [32, N] f32
        hf = jnp.tanh(root + agg + bias_ref[l * d:(l + 1) * d, :])         # f32, lane-dense
        concat_ref[l * d:(l + 1) * d, :] = hf                 # slab write, sublane offset
        h_bf = hf.astype(jnp.bfloat16)

    concat = concat_ref[...]                                  # [128, N] f32

    # Readout: build one-hot selection in-kernel (no HBM one-hot traffic) and
    # contract the node/lane axes so the result is already [graph, feature].
    b_pad = users_ref.shape[0]
    node_ids = lax.broadcasted_iota(jnp.int32, (b_pad, n_pad), 1)
    sel_u = (node_ids == users_ref[...]).astype(jnp.float32)   # [B_pad, N]
    sel_i = (node_ids == items_ref[...]).astype(jnp.float32)
    dn = (((1,), (1,)), ((), ()))                              # contract lane axes
    gu = lax.dot_general(sel_u, concat, dn, preferred_element_type=jnp.float32)  # [B_pad,128]
    gi = lax.dot_general(sel_i, concat, dn, preferred_element_type=jnp.float32)  # [B_pad,128]
    g = jnp.concatenate([gu, gi], axis=1).astype(jnp.bfloat16)                   # [B_pad,256]

    # MLP head (dropout is identity in eval).  Output lane-dense [B_pad, 128].
    h1 = jnp.dot(g, lin1w_ref[...], preferred_element_type=jnp.float32) + lin1b_ref[...]
    h1 = jnp.maximum(h1, 0.0).astype(jnp.bfloat16)
    out = jnp.dot(h1, lin2w_ref[...], preferred_element_type=jnp.float32) + lin2b_ref[...]
    out_ref[...] = out


def igmc_fused_call(msgs0_t, adjT, params, users_idx, items_idx, n_pad, b_pad):
    vmem = pl.BlockSpec(memory_space=pltpu.MemorySpace.VMEM)
    # VMEM footprint estimate (operands + concat scratch + transient [96,N] slabs).
    est = (msgs0_t.size * 4 + adjT.size * 2
           + 3 * (NUM_RELATIONS + 1) * HIDDEN * HIDDEN * 2
           + CONCAT_DIM * 4 + 2 * b_pad * 4
           + HEAD_IN * HEAD_HID * 2 + HEAD_HID * 4 + HEAD_HID * HEAD_HID * 2 + HEAD_HID * 4
           + b_pad * HEAD_HID * 4
           + CONCAT_DIM * n_pad * 4
           + 3 * (NUM_RELATIONS + 1) * HIDDEN * n_pad * 4)
    vmem_limit = int(max(32 * 1024 * 1024, min(96 * 1024 * 1024, 2 * est)))
    return pl.pallas_call(
        _igmc_fused_kernel,
        out_shape=jax.ShapeDtypeStruct((b_pad, HEAD_HID), jnp.float32),
        in_specs=[vmem] * 12,
        out_specs=vmem,
        scratch_shapes=[pltpu.VMEM((CONCAT_DIM, n_pad), jnp.float32)],
        compiler_params=pltpu.CompilerParams(vmem_limit_bytes=vmem_limit),
    )(msgs0_t, adjT,
      params["w_t"][0], params["w_t"][1], params["w_t"][2],
      params["bias_t"], users_idx, items_idx,
      params["lin1_w"], params["lin1_b"], params["lin2_w_pad"], params["lin2_b_pad"])


# ---------------------------------------------------------------------------
# Glue: transposed stacked adjacency, transposed/folded parameters, forward.
# ---------------------------------------------------------------------------
def build_stacked_adj_T(edge_index, edge_type, num_nodes, n_pad, num_relations):
    """Transposed stacked adjacency [A_0^T ; A_1^T] of shape [R*N_pad, N_pad].

    A_r[dst, src] = 1/deg_r(dst)  (PyG RGCNConv mean aggregation); stored as
    A_r^T[src, dst] so the node/destination axis lands on MXU lanes.
    Normalization in f32, cast to bf16 for the MXU.
    """
    src, dst = edge_index[0], edge_index[1]
    a = jnp.zeros((num_relations, num_nodes, num_nodes), jnp.float32)
    a = a.at[edge_type, dst, src].add(1.0)
    deg = a.sum(axis=-1, keepdims=True)
    a = a / jnp.maximum(deg, 1.0)
    a_t = a.transpose(0, 2, 1)                                # [r, src, dst]
    a_t = jnp.pad(a_t, ((0, 0), (0, n_pad - num_nodes), (0, n_pad - num_nodes)))
    return a_t.reshape(num_relations * n_pad, n_pad).astype(jnp.bfloat16)


def init_params(key, num_node_features):
    dims = (num_node_features,) + LATENT_DIM
    w_t, biases = [], []
    for i in range(NUM_LAYERS):
        fin, fout = dims[i], dims[i + 1]
        key, kb, kc, kr = jax.random.split(key, 4)
        basis = 0.1 * jax.random.normal(kb, (NUM_BASES, fin, fout), jnp.float32)
        comp = 0.1 * jax.random.normal(kc, (NUM_RELATIONS, NUM_BASES), jnp.float32)
        w_rel = jnp.einsum("rb,bio->rio", comp, basis)        # basis decomposition
        w_root = 0.1 * jax.random.normal(kr, (fin, fout), jnp.float32)
        # Transposed fold: [(R+1)*32, Fin] = [W_0^T ; W_1^T ; W_root^T]
        wt = jnp.concatenate([w_rel[r].T for r in range(NUM_RELATIONS)] + [w_root.T],
                             axis=0)
        w_t.append(wt)
        biases.append(jnp.zeros((fout,), jnp.float32))
    key, k1, k2 = jax.random.split(key, 3)
    lin1_w = 0.1 * jax.random.normal(k1, (HEAD_IN, HEAD_HID), jnp.float32)
    lin2_w = 0.1 * jax.random.normal(k2, (HEAD_HID, CLASS_VALUES), jnp.float32)
    lin2_w_pad = jnp.zeros((HEAD_HID, HEAD_HID), jnp.float32).at[:, :CLASS_VALUES].set(lin2_w)
    return {
        "w0_t": w_t[0],                                         # [96, F] f32 (wrapper)
        "w_t": [w.astype(jnp.bfloat16) for w in w_t[1:]],       # 3 x [96, 32] bf16
        "bias_t": jnp.concatenate(biases).reshape(CONCAT_DIM, 1),  # [128, 1] f32 (column)
        "lin1_w": lin1_w.astype(jnp.bfloat16),                  # [256, 128] bf16
        "lin1_b": jnp.zeros((1, HEAD_HID), jnp.float32),
        "lin2_w_pad": lin2_w_pad.astype(jnp.bfloat16),          # [128, 128] bf16 (cols 0:2 real)
        "lin2_b_pad": jnp.zeros((1, HEAD_HID), jnp.float32),
    }


@functools.partial(jax.jit, static_argnames=("num_graphs",))
def igmc_forward(params, x, edge_index, edge_type, *, num_graphs):
    num_nodes = x.shape[0]
    n_pad = _round_up(max(num_nodes, LANE), LANE)               # full vregs on the lane axis
    b_pad = _round_up(max(num_graphs, SUBLANE), SUBLANE)

    adjT = build_stacked_adj_T(edge_index, edge_type, num_nodes, n_pad, NUM_RELATIONS)

    # Layer-0 messages off the MXU (K = num_node_features = 4 one-hot types).
    x_pad = jnp.pad(x, ((0, n_pad - num_nodes), (0, 0)))
    msgs0_t = jnp.dot(params["w0_t"], x_pad.T)                  # [96, N_pad] f32

    # IGMC readout: one user node (x[:,0]==1) and one item node (x[:,1]==1) per
    # graph.  Only the int32 indices go to the kernel; padded slots use -1 so
    # the in-kernel one-hot never matches (zero rows, sliced off below).
    # NOTE: nonzero(size=...) pads with index 0 for malformed batches.
    users = jnp.nonzero(x[:, 0] == 1, size=num_graphs)[0].astype(jnp.int32)
    items = jnp.nonzero(x[:, 1] == 1, size=num_graphs)[0].astype(jnp.int32)
    users_idx = jnp.full((b_pad, 1), -1, jnp.int32).at[:num_graphs, 0].set(users)
    items_idx = jnp.full((b_pad, 1), -1, jnp.int32).at[:num_graphs, 0].set(items)

    out_pad = igmc_fused_call(msgs0_t, adjT, params, users_idx, items_idx, n_pad, b_pad)
    return out_pad[:num_graphs, :CLASS_VALUES]


# ---------------------------------------------------------------------------
if __name__ == "__main__":
    key = jax.random.PRNGKey(0)

    num_graphs = 2
    nodes_per_graph = 8
    num_nodes = num_graphs * nodes_per_graph
    num_node_features = 4
    edges_per_graph = 20

    # --- deterministic synthetic graph batch -------------------------------
    # Node 0 of each graph is the "user" (one-hot col 0), node 1 the "item"
    # (one-hot col 1), the rest alternate cols 2/3.
    x = jnp.zeros((num_nodes, num_node_features), jnp.float32)
    for gidx in range(num_graphs):
        base = gidx * nodes_per_graph
        x = x.at[base + 0, 0].set(1.0)
        x = x.at[base + 1, 1].set(1.0)
        for n in range(2, nodes_per_graph):
            x = x.at[base + n, 2 + (n % 2)].set(1.0)

    key, ks, kd, kt = jax.random.split(key, 4)
    src_local = jax.random.randint(ks, (num_graphs, edges_per_graph), 0, nodes_per_graph)
    dst_local = jax.random.randint(kd, (num_graphs, edges_per_graph), 0, nodes_per_graph)
    etype = jax.random.randint(kt, (num_graphs, edges_per_graph), 0, NUM_RELATIONS)
    offset = (jnp.arange(num_graphs) * nodes_per_graph)[:, None]
    edge_index = jnp.stack(
        [(src_local + offset).reshape(-1), (dst_local + offset).reshape(-1)], axis=0
    ).astype(jnp.int32)
    edge_type = etype.reshape(-1).astype(jnp.int32)

    # --- parameters + run ---------------------------------------------------
    key, kp = jax.random.split(key)
    params = init_params(kp, num_node_features)

    out = igmc_forward(params, x, edge_index, edge_type, num_graphs=num_graphs)
    out = jax.block_until_ready(out)

    assert out.shape == (num_graphs, CLASS_VALUES), out.shape
    assert bool(jnp.all(jnp.isfinite(out)))
    print("KERNEL_OK")
</pallas_src>

<mosaic_0001>
module attributes {stable_mosaic.version = 11 : i64} {
  func.func private @main(%arg0: i32) attributes {dimension_semantics = [#tpu.dimension_semantics<core_parallel>], iteration_bounds = array<i64: 2>, tpu.core_type = #tpu.core_type<sc_scalar_subcore>, window_params = []} {
    return
  }
}

module attributes {stable_mosaic.version = 11 : i64} {
  func.func private @main(%arg0: i32) attributes {dimension_semantics = [#tpu.dimension_semantics<core_parallel>], iteration_bounds = array<i64: 2>, tpu.core_type = #tpu.core_type<sc_scalar_subcore>, window_params = []} {
    return
  }
}

module attributes {stable_mosaic.version = 11 : i64} {
  func.func @_igmc_fused_kernel(%arg0: memref<96x128xf32, #tpu.memory_space<vmem>>, %arg1: memref<256x128xbf16, #tpu.memory_space<vmem>>, %arg2: memref<96x32xbf16, #tpu.memory_space<vmem>>, %arg3: memref<96x32xbf16, #tpu.memory_space<vmem>>, %arg4: memref<96x32xbf16, #tpu.memory_space<vmem>>, %arg5: memref<128x1xf32, #tpu.memory_space<vmem>>, %arg6: memref<8x1xi32, #tpu.memory_space<vmem>>, %arg7: memref<8x1xi32, #tpu.memory_space<vmem>>, %arg8: memref<256x128xbf16, #tpu.memory_space<vmem>>, %arg9: memref<1x128xf32, #tpu.memory_space<vmem>>, %arg10: memref<128x128xbf16, #tpu.memory_space<vmem>>, %arg11: memref<1x128xf32, #tpu.memory_space<vmem>>, %arg12: memref<8x128xf32, #tpu.memory_space<vmem>>, %arg13: memref<128x128xf32, #tpu.memory_space<vmem>>) attributes {dimension_semantics = [], scalar_prefetch = 0 : i64, scratch_operands = 1 : i64, tpu.core_type = #tpu.core_type<tc>} {
    %c0 = arith.constant 0 : index
    %c0_0 = arith.constant 0 : index
    %0 = vector.load %arg0[%c0, %c0_0] : memref<96x128xf32, #tpu.memory_space<vmem>>, vector<96x128xf32>
    %1 = vector.extract_strided_slice %0 {offsets = [0, 0], sizes = [32, 128], strides = [1, 1]} : vector<96x128xf32> to vector<32x128xf32>
    %2 = arith.truncf %1 : vector<32x128xf32> to vector<32x128xbf16>
    %c0_1 = arith.constant 0 : index
    %c0_2 = arith.constant 0 : index
    %3 = vector.load %arg1[%c0_1, %c0_2] : memref<256x128xbf16, #tpu.memory_space<vmem>>, vector<128x128xbf16>
    %cst = arith.constant dense<0.000000e+00> : vector<32x128xf32>
    %4 = tpu.matmul %2, %3, %cst {dimension_numbers = #tpu.dot_dimension_numbers<[1], [0], [0], [1], [0, 0, 1, 1], [], []>} : vector<32x128xbf16>, vector<128x128xbf16>, vector<32x128xf32> -> vector<32x128xf32>
    %5 = vector.extract_strided_slice %0 {offsets = [32, 0], sizes = [32, 128], strides = [1, 1]} : vector<96x128xf32> to vector<32x128xf32>
    %6 = arith.truncf %5 : vector<32x128xf32> to vector<32x128xbf16>
    %c128 = arith.constant 128 : index
    %c0_3 = arith.constant 0 : index
    %7 = vector.load %arg1[%c128, %c0_3] : memref<256x128xbf16, #tpu.memory_space<vmem>>, vector<128x128xbf16>
    %cst_4 = arith.constant dense<0.000000e+00> : vector<32x128xf32>
    %8 = tpu.matmul %6, %7, %cst_4 {dimension_numbers = #tpu.dot_dimension_numbers<[1], [0], [0], [1], [0, 0, 1, 1], [], []>} : vector<32x128xbf16>, vector<128x128xbf16>, vector<32x128xf32> -> vector<32x128xf32>
    %9 = arith.addf %4, %8 : vector<32x128xf32>
    %10 = vector.extract_strided_slice %0 {offsets = [64, 0], sizes = [32, 128], strides = [1, 1]} : vector<96x128xf32> to vector<32x128xf32>
    %11 = arith.addf %10, %9 : vector<32x128xf32>
    %c0_5 = arith.constant 0 : index
    %c0_6 = arith.constant 0 : index
    %12 = vector.load %arg5[%c0_5, %c0_6] : memref<128x1xf32, #tpu.memory_space<vmem>>, vector<32x1xf32>
    %13 = vector.broadcast %12 : vector<32x1xf32> to vector<32x128xf32>
    %14 = arith.addf %11, %13 : vector<32x128xf32>
    %15 = math.tanh %14 : vector<32x128xf32>
    %c0_7 = arith.constant 0 : index
    %c0_8 = arith.constant 0 : index
    %16 = vector.load %arg13[%c0_7, %c0_8] : memref<128x128xf32, #tpu.memory_space<vmem>>, vector<32x128xf32>
    tpu.vector_store %arg13[%c0_7, %c0_8], %15 {strides = array<i32>} : memref<128x128xf32, #tpu.memory_space<vmem>>, vector<32x128xf32>,
    %17 = arith.truncf %15 : vector<32x128xf32> to vector<32x128xbf16>
    %c0_9 = arith.constant 0 : index
    %c0_10 = arith.constant 0 : index
    %18 = vector.load %arg2[%c0_9, %c0_10] : memref<96x32xbf16, #tpu.memory_space<vmem>>, vector<96x32xbf16>
    %cst_11 = arith.constant dense<0.000000e+00> : vector<96x128xf32>
    %19 = tpu.matmul %18, %17, %cst_11 {dimension_numbers = #tpu.dot_dimension_numbers<[1], [0], [0], [1], [0, 0, 1, 1], [], []>} : vector<96x32xbf16>, vector<32x128xbf16>, vector<96x128xf32> -> vector<96x128xf32>
    %20 = vector.extract_strided_slice %19 {offsets = [0, 0], sizes = [32, 128], strides = [1, 1]} : vector<96x128xf32> to vector<32x128xf32>
    %21 = arith.truncf %20 : vector<32x128xf32> to vector<32x128xbf16>
    %c0_12 = arith.constant 0 : index
    %c0_13 = arith.constant 0 : index
    %22 = vector.load %arg1[%c0_12, %c0_13] : memref<256x128xbf16, #tpu.memory_space<vmem>>, vector<128x128xbf16>
    %cst_14 = arith.constant dense<0.000000e+00> : vector<32x128xf32>
    %23 = tpu.matmul %21, %22, %cst_14 {dimension_numbers = #tpu.dot_dimension_numbers<[1], [0], [0], [1], [0, 0, 1, 1], [], []>} : vector<32x128xbf16>, vector<128x128xbf16>, vector<32x128xf32> -> vector<32x128xf32>
    %24 = vector.extract_strided_slice %19 {offsets = [32, 0], sizes = [32, 128], strides = [1, 1]} : vector<96x128xf32> to vector<32x128xf32>
    %25 = arith.truncf %24 : vector<32x128xf32> to vector<32x128xbf16>
    %c128_15 = arith.constant 128 : index
    %c0_16 = arith.constant 0 : index
    %26 = vector.load %arg1[%c128_15, %c0_16] : memref<256x128xbf16, #tpu.memory_space<vmem>>, vector<128x128xbf16>
    %cst_17 = arith.constant dense<0.000000e+00> : vector<32x128xf32>
    %27 = tpu.matmul %25, %26, %cst_17 {dimension_numbers = #tpu.dot_dimension_numbers<[1], [0], [0], [1], [0, 0, 1, 1], [], []>} : vector<32x128xbf16>, vector<128x128xbf16>, vector<32x128xf32> -> vector<32x128xf32>
    %28 = arith.addf %23, %27 : vector<32x128xf32>
    %29 = vector.extract_strided_slice %19 {offsets = [64, 0], sizes = [32, 128], strides = [1, 1]} : vector<96x128xf32> to vector<32x128xf32>
    %30 = arith.addf %29, %28 : vector<32x128xf32>
    %c32 = arith.constant 32 : index
    %c0_18 = arith.constant 0 : index
    %31 = vector.load %arg5[%c32, %c0_18] : memref<128x1xf32, #tpu.memory_space<vmem>>, vector<32x1xf32>
    %32 = vector.broadcast %31 : vector<32x1xf32> to vector<32x128xf32>
    %33 = arith.addf %30, %32 : vector<32x128xf32>
    %34 = math.tanh %33 : vector<32x128xf32>
    %c32_19 = arith.constant 32 : index
    %c0_20 = arith.constant 0 : index
    %35 = vector.load %arg13[%c32_19, %c0_20] : memref<128x128xf32, #tpu.memory_space<vmem>>, vector<32x128xf32>
    tpu.vector_store %arg13[%c32_19, %c0_20], %34 {strides = array<i32>} : memref<128x128xf32, #tpu.memory_space<vmem>>, vector<32x128xf32>,
    %36 = arith.truncf %34 : vector<32x128xf32> to vector<32x128xbf16>
    %c0_21 = arith.constant 0 : index
    %c0_22 = arith.constant 0 : index
    %37 = vector.load %arg3[%c0_21, %c0_22] : memref<96x32xbf16, #tpu.memory_space<vmem>>, vector<96x32xbf16>
    %cst_23 = arith.constant dense<0.000000e+00> : vector<96x128xf32>
    %38 = tpu.matmul %37, %36, %cst_23 {dimension_numbers = #tpu.dot_dimension_numbers<[1], [0], [0], [1], [0, 0, 1, 1], [], []>} : vector<96x32xbf16>, vector<32x128xbf16>, vector<96x128xf32> -> vector<96x128xf32>
    %39 = vector.extract_strided_slice %38 {offsets = [0, 0], sizes = [32, 128], strides = [1, 1]} : vector<96x128xf32> to vector<32x128xf32>
    %40 = arith.truncf %39 : vector<32x128xf32> to vector<32x128xbf16>
    %c0_24 = arith.constant 0 : index
    %c0_25 = arith.constant 0 : index
    %41 = vector.load %arg1[%c0_24, %c0_25] : memref<256x128xbf16, #tpu.memory_space<vmem>>, vector<128x128xbf16>
    %cst_26 = arith.constant dense<0.000000e+00> : vector<32x128xf32>
    %42 = tpu.matmul %40, %41, %cst_26 {dimension_numbers = #tpu.dot_dimension_numbers<[1], [0], [0], [1], [0, 0, 1, 1], [], []>} : vector<32x128xbf16>, vector<128x128xbf16>, vector<32x128xf32> -> vector<32x128xf32>
    %43 = vector.extract_strided_slice %38 {offsets = [32, 0], sizes = [32, 128], strides = [1, 1]} : vector<96x128xf32> to vector<32x128xf32>
    %44 = arith.truncf %43 : vector<32x128xf32> to vector<32x128xbf16>
    %c128_27 = arith.constant 128 : index
    %c0_28 = arith.constant 0 : index
    %45 = vector.load %arg1[%c128_27, %c0_28] : memref<256x128xbf16, #tpu.memory_space<vmem>>, vector<128x128xbf16>
    %cst_29 = arith.constant dense<0.000000e+00> : vector<32x128xf32>
    %46 = tpu.matmul %44, %45, %cst_29 {dimension_numbers = #tpu.dot_dimension_numbers<[1], [0], [0], [1], [0, 0, 1, 1], [], []>} : vector<32x128xbf16>, vector<128x128xbf16>, vector<32x128xf32> -> vector<32x128xf32>
    %47 = arith.addf %42, %46 : vector<32x128xf32>
    %48 = vector.extract_strided_slice %38 {offsets = [64, 0], sizes = [32, 128], strides = [1, 1]} : vector<96x128xf32> to vector<32x128xf32>
    %49 = arith.addf %48, %47 : vector<32x128xf32>
    %c64 = arith.constant 64 : index
    %c0_30 = arith.constant 0 : index
    %50 = vector.load %arg5[%c64, %c0_30] : memref<128x1xf32, #tpu.memory_space<vmem>>, vector<32x1xf32>
    %51 = vector.broadcast %50 : vector<32x1xf32> to vector<32x128xf32>
    %52 = arith.addf %49, %51 : vector<32x128xf32>
    %53 = math.tanh %52 : vector<32x128xf32>
    %c64_31 = arith.constant 64 : index
    %c0_32 = arith.constant 0 : index
    %54 = vector.load %arg13[%c64_31, %c0_32] : memref<128x128xf32, #tpu.memory_space<vmem>>, vector<32x128xf32>
    tpu.vector_store %arg13[%c64_31, %c0_32], %53 {strides = array<i32>} : memref<128x128xf32, #tpu.memory_space<vmem>>, vector<32x128xf32>,
    %55 = arith.truncf %53 : vector<32x128xf32> to vector<32x128xbf16>
    %c0_33 = arith.constant 0 : index
    %c0_34 = arith.constant 0 : index
    %56 = vector.load %arg4[%c0_33, %c0_34] : memref<96x32xbf16, #tpu.memory_space<vmem>>, vector<96x32xbf16>
    %cst_35 = arith.constant dense<0.000000e+00> : vector<96x128xf32>
    %57 = tpu.matmul %56, %55, %cst_35 {dimension_numbers = #tpu.dot_dimension_numbers<[1], [0], [0], [1], [0, 0, 1, 1], [], []>} : vector<96x32xbf16>, vector<32x128xbf16>, vector<96x128xf32> -> vector<96x128xf32>
    %58 = vector.extract_strided_slice %57 {offsets = [0, 0], sizes = [32, 128], strides = [1, 1]} : vector<96x128xf32> to vector<32x128xf32>
    %59 = arith.truncf %58 : vector<32x128xf32> to vector<32x128xbf16>
    %c0_36 = arith.constant 0 : index
    %c0_37 = arith.constant 0 : index
    %60 = vector.load %arg1[%c0_36, %c0_37] : memref<256x128xbf16, #tpu.memory_space<vmem>>, vector<128x128xbf16>
    %cst_38 = arith.constant dense<0.000000e+00> : vector<32x128xf32>
    %61 = tpu.matmul %59, %60, %cst_38 {dimension_numbers = #tpu.dot_dimension_numbers<[1], [0], [0], [1], [0, 0, 1, 1], [], []>} : vector<32x128xbf16>, vector<128x128xbf16>, vector<32x128xf32> -> vector<32x128xf32>
    %62 = vector.extract_strided_slice %57 {offsets = [32, 0], sizes = [32, 128], strides = [1, 1]} : vector<96x128xf32> to vector<32x128xf32>
    %63 = arith.truncf %62 : vector<32x128xf32> to vector<32x128xbf16>
    %c128_39 = arith.constant 128 : index
    %c0_40 = arith.constant 0 : index
    %64 = vector.load %arg1[%c128_39, %c0_40] : memref<256x128xbf16, #tpu.memory_space<vmem>>, vector<128x128xbf16>
    %cst_41 = arith.constant dense<0.000000e+00> : vector<32x128xf32>
    %65 = tpu.matmul %63, %64, %cst_41 {dimension_numbers = #tpu.dot_dimension_numbers<[1], [0], [0], [1], [0, 0, 1, 1], [], []>} : vector<32x128xbf16>, vector<128x128xbf16>, vector<32x128xf32> -> vector<32x128xf32>
    %66 = arith.addf %61, %65 : vector<32x128xf32>
    %67 = vector.extract_strided_slice %57 {offsets = [64, 0], sizes = [32, 128], strides = [1, 1]} : vector<96x128xf32> to vector<32x128xf32>
    %68 = arith.addf %67, %66 : vector<32x128xf32>
    %c96 = arith.constant 96 : index
    %c0_42 = arith.constant 0 : index
    %69 = vector.load %arg5[%c96, %c0_42] : memref<128x1xf32, #tpu.memory_space<vmem>>, vector<32x1xf32>
    %70 = vector.broadcast %69 : vector<32x1xf32> to vector<32x128xf32>
    %71 = arith.addf %68, %70 : vector<32x128xf32>
    %72 = math.tanh %71 : vector<32x128xf32>
    %c96_43 = arith.constant 96 : index
    %c0_44 = arith.constant 0 : index
    %73 = vector.load %arg13[%c96_43, %c0_44] : memref<128x128xf32, #tpu.memory_space<vmem>>, vector<32x128xf32>
    tpu.vector_store %arg13[%c96_43, %c0_44], %72 {strides = array<i32>} : memref<128x128xf32, #tpu.memory_space<vmem>>, vector<32x128xf32>,
    %c0_45 = arith.constant 0 : index
    %c0_46 = arith.constant 0 : index
    %74 = vector.load %arg13[%c0_45, %c0_46] : memref<128x128xf32, #tpu.memory_space<vmem>>, vector<128x128xf32>
    %75 = tpu.iota {dimensions = array<i32: 1>} : vector<8x128xi32>
    %c0_47 = arith.constant 0 : index
    %c0_48 = arith.constant 0 : index
    %76 = vector.load %arg6[%c0_47, %c0_48] : memref<8x1xi32, #tpu.memory_space<vmem>>, vector<8x1xi32>
    %77 = vector.broadcast %76 : vector<8x1xi32> to vector<8x128xi32>
    %78 = arith.cmpi eq, %75, %77 : vector<8x128xi32>
    %79 = arith.extui %78 : vector<8x128xi1> to vector<8x128xi32>
    %80 = arith.sitofp %79 : vector<8x128xi32> to vector<8x128xf32>
    %c0_49 = arith.constant 0 : index
    %c0_50 = arith.constant 0 : index
    %81 = vector.load %arg7[%c0_49, %c0_50] : memref<8x1xi32, #tpu.memory_space<vmem>>, vector<8x1xi32>
    %82 = vector.broadcast %81 : vector<8x1xi32> to vector<8x128xi32>
    %83 = arith.cmpi eq, %75, %82 : vector<8x128xi32>
    %84 = arith.extui %83 : vector<8x128xi1> to vector<8x128xi32>
    %85 = arith.sitofp %84 : vector<8x128xi32> to vector<8x128xf32>
    %cst_51 = arith.constant dense<0.000000e+00> : vector<8x128xf32>
    %86 = tpu.matmul %80, %74, %cst_51 {dimension_numbers = #tpu.dot_dimension_numbers<[1], [1], [0], [0], [0, 0, 1, 0], [], []>} : vector<8x128xf32>, vector<128x128xf32>, vector<8x128xf32> -> vector<8x128xf32>
    %cst_52 = arith.constant dense<0.000000e+00> : vector<8x128xf32>
    %87 = tpu.matmul %85, %74, %cst_52 {dimension_numbers = #tpu.dot_dimension_numbers<[1], [1], [0], [0], [0, 0, 1, 0], [], []>} : vector<8x128xf32>, vector<128x128xf32>, vector<8x128xf32> -> vector<8x128xf32>
    %88 = tpu.concatenate %86, %87 in 1 : vector<8x128xf32>, vector<8x128xf32> -> vector<8x256xf32>
    %89 = arith.truncf %88 : vector<8x256xf32> to vector<8x256xbf16>
    %c0_53 = arith.constant 0 : index
    %c0_54 = arith.constant 0 : index
    %90 = vector.load %arg8[%c0_53, %c0_54] : memref<256x128xbf16, #tpu.memory_space<vmem>>, vector<256x128xbf16>
    %cst_55 = arith.constant dense<0.000000e+00> : vector<8x128xf32>
    %91 = tpu.matmul %89, %90, %cst_55 {dimension_numbers = #tpu.dot_dimension_numbers<[1], [0], [0], [1], [0, 0, 1, 1], [], []>} : vector<8x256xbf16>, vector<256x128xbf16>, vector<8x128xf32> -> vector<8x128xf32>
    %c0_56 = arith.constant 0 : index
    %c0_57 = arith.constant 0 : index
    %92 = vector.load %arg9[%c0_56, %c0_57] : memref<1x128xf32, #tpu.memory_space<vmem>>, vector<1x128xf32>
    %93 = vector.broadcast %92 : vector<1x128xf32> to vector<8x128xf32>
    %94 = arith.addf %91, %93 : vector<8x128xf32>
    %cst_58 = arith.constant 0.000000e+00 : f32
    %95 = vector.broadcast %cst_58 : f32 to vector<8x128xf32>
    %96 = arith.maximumf %94, %95 : vector<8x128xf32>
    %97 = arith.truncf %96 : vector<8x128xf32> to vector<8x128xbf16>
    %c0_59 = arith.constant 0 : index
    %c0_60 = arith.constant 0 : index
    %98 = vector.load %arg10[%c0_59, %c0_60] : memref<128x128xbf16, #tpu.memory_space<vmem>>, vector<128x128xbf16>
    %cst_61 = arith.constant dense<0.000000e+00> : vector<8x128xf32>
    %99 = tpu.matmul %97, %98, %cst_61 {dimension_numbers = #tpu.dot_dimension_numbers<[1], [0], [0], [1], [0, 0, 1, 1], [], []>} : vector<8x128xbf16>, vector<128x128xbf16>, vector<8x128xf32> -> vector<8x128xf32>
    %c0_62 = arith.constant 0 : index
    %c0_63 = arith.constant 0 : index
    %100 = vector.load %arg11[%c0_62, %c0_63] : memref<1x128xf32, #tpu.memory_space<vmem>>, vector<1x128xf32>
    %101 = vector.broadcast %100 : vector<1x128xf32> to vector<8x128xf32>
    %102 = arith.addf %99, %101 : vector<8x128xf32>
    %c0_64 = arith.constant 0 : index
    %c0_65 = arith.constant 0 : index
    %103 = vector.load %arg12[%c0_64, %c0_65] : memref<8x128xf32, #tpu.memory_space<vmem>>, vector<8x128xf32>
    tpu.vector_store %arg12[%c0_64, %c0_65], %102 {strides = array<i32>} : memref<8x128xf32, #tpu.memory_space<vmem>>, vector<8x128xf32>,
    return
  }
}

</mosaic_0001>

<bundles_post_ra>
// kernel: igmc_forward.1
= control target key start
LH: loop header
LB: loop body
LE: loop exit
PB: predicated region body
PF: predicated region fallthrough
CT: control target
= control target key end

     0   :  { %v2849_v1 = vmov 0   ;;  %vm368_vm0 = vcmask 261120   ;;  %vm2851_vm1 = vmmov 0   ;;  %s3420_s1 = inlined_call_operand.vmem [shape: bf16[256,128], index: 1, kind: input, shape index: {}]   ;;  %s3421_s0 = inlined_call_operand.vmem [shape: f32[96,128], index: 0, kind: input, shape index: {}]   ;;  %s3422_s5 = inlined_call_operand.vmem [shape: f32[128,1], index: 5, kind: input, shape index: {}]   ;;  %s3423_s7 = inlined_call_operand.vmem [shape: s32[8,1], index: 7, kind: input, shape index: {}]   ;;  %s3424_s6 = inlined_call_operand.vmem [shape: s32[8,1], index: 6, kind: input, shape index: {}]   ;;  %s3425_s2 = inlined_call_operand.vmem [shape: bf16[96,32], index: 2, kind: input, shape index: {}]   ;;  %s3426_s3 = inlined_call_operand.vmem [shape: bf16[96,32], index: 3, kind: input, shape index: {}]   ;;  %s3427_s4 = inlined_call_operand.vmem [shape: bf16[96,32], index: 4, kind: input, shape index: {}]   ;;  %s3428_s8 = inlined_call_operand.vmem [shape: bf16[256,128], index: 8, kind: input, shape index: {}]   ;;  %s3429_s10 = inlined_call_operand.vmem [shape: bf16[128,128], index: 10, kind: input, shape index: {}]   ;;  %s3430_s9 = inlined_call_operand.vmem [shape: f32[1,128], index: 9, kind: input, shape index: {}]   ;;  %s3431_s11 = inlined_call_operand.vmem [shape: f32[1,128], index: 11, kind: input, shape index: {}]   ;;  %s3432_s12 = inlined_call_operand.vmem [shape: f32[8,128], index: 12, kind: output, shape index: {}]  }
   0x1   :  { %v2711_v0 = vld [vmem:[%s3420_s1 + $0x40] sm:$0xff]   ;;  %2709 = vset.pattern.permute.xlu0 %v2849_v1  ;;  %2710 = vset.pattern.permute.xlu1 %v2849_v1  ;;  %v2712_v2 = vld [vmem:[%s3420_s1 + $0x48] sm:$0xff]   ;;  %v2713_v3 = vld [vmem:[%s3420_s1 + $0x50] sm:$0xff]  }
   0x2   :  { %2330 = vmatprep.subr.bf16.mxu0 %v2711_v0  ;;  %v2714_v4 = vld [vmem:[%s3420_s1 + $0x58] sm:$0xff]   ;;  %v46_v5 = vld [vmem:[%s3421_s0 + $0x20] sm:$0xff]  ;;  %v47_v6 = vld [vmem:[%s3421_s0 + $0x28] sm:$0xff] }
   0x3   :  { %2331 = vmatpush3.bf16.msra.mxu0 %v2711_v0  ;;  %v72_v7 = vpack.c.bf16 %v47_v6, %v46_v5  ;;  %v2715_v8 = vld [vmem:[%s3420_s1 + $0x60] sm:$0xff]   ;;  %v2716_v9 = vld [vmem:[%s3420_s1 + $0x68] sm:$0xff]   ;;  %v290_v11 = vld [vmem:[%s3422_s5 + $0x10] sm:$0xff] }
   0x4   :  { %2332 = vmatprep.subr.bf16.mxu0 %v2712_v2  ;;  %v288_v10 = vld [vmem:[%s3422_s5] sm:$0xff]  ;;  %v2717_v12 = vld [vmem:[%s3420_s1 + $0x70] sm:$0xff]   ;;  %304 = vperm.xlu1 %2710, %v290_v11   ;;  %v289_v13 = vld [vmem:[%s3422_s5 + $0x8] sm:$0xff] }
   0x5   :  { %2346 = vmatprep.mubr.bf16.mxu0 %v72_v7  ;;  %294 = vperm.xlu0 %2709, %v288_v10   ;;  %v291_v14 = vld [vmem:[%s3422_s5 + $0x18] sm:$0xff]  ;;  %v702_v16 = vld [vmem:[%s3422_s5 + $0x20] sm:$0xff]  ;;  %v703_v17 = vld [vmem:[%s3422_s5 + $0x28] sm:$0xff] }
   0x6   :  { %v2718_v15 = vld [vmem:[%s3420_s1 + $0x78] sm:$0xff]   ;;  %v48_v18 = vld [vmem:[%s3421_s0 + $0x30] sm:$0xff]  ;;  %v2719_v20 = vld [vmem:[%s3420_s1] sm:$0xff]  }
   0x7   :  { %2333 = vmatpush3.bf16.msra.mxu0 %v2712_v2  ;;  %v49_v19 = vld [vmem:[%s3421_s0 + $0x38] sm:$0xff]  ;;  %v42_v21 = vld [vmem:[%s3421_s0] sm:$0xff]  ;;  %v43_v22 = vld [vmem:[%s3421_s0 + $0x8] sm:$0xff] }
   0x8   :  { %2334 = vmatprep.subr.bf16.mxu0 %v2713_v3  ;;  %309 = vperm.xlu1 %2710, %v291_v14   ;;  %v704_v23 = vld [vmem:[%s3422_s5 + $0x30] sm:$0xff]  ;;  %v705_v24 = vld [vmem:[%s3422_s5 + $0x38] sm:$0xff]  ;;  %v73_v25 = vpack.c.bf16 %v49_v19, %v48_v18  ;;  %v2720_v26 = vld [vmem:[%s3420_s1 + $0x8] sm:$0xff]   ;;  %v54_v27 = vpack.c.bf16 %v43_v22, %v42_v21 }
   0x9   :  { %299 = vperm.xlu0 %2709, %v289_v13   ;;  %v1115_v28 = vld [vmem:[%s3422_s5 + $0x40] sm:$0xff]  ;;  %v1116_v29 = vld [vmem:[%s3422_s5 + $0x48] sm:$0xff]  ;;  %v2721_v30 = vld [vmem:[%s3420_s1 + $0x10] sm:$0xff]  }
   0xa   :  { %v1117_v31 = vld [vmem:[%s3422_s5 + $0x50] sm:$0xff]  ;;  %v1118_v32 = vld [vmem:[%s3422_s5 + $0x58] sm:$0xff]  ;;  %v1528_v34 = vld [vmem:[%s3422_s5 + $0x60] sm:$0xff] }
   0xb   :  { %2335 = vmatpush3.bf16.msra.mxu0 %v2713_v3  ;;  %v2722_v33 = vld [vmem:[%s3420_s1 + $0x18] sm:$0xff]   ;;  %v1529_v35 = vld [vmem:[%s3422_s5 + $0x68] sm:$0xff]  ;;  %v2723_v36 = vld [vmem:[%s3420_s1 + $0x20] sm:$0xff]  }
   0xc   :  { %2336 = vmatprep.subr.bf16.mxu0 %v2714_v4  ;;  %713 = vperm.xlu1 %2710, %v703_v17   ;;  %v1530_v37 = vld [vmem:[%s3422_s5 + $0x70] sm:$0xff]  ;;  %v1531_v38 = vld [vmem:[%s3422_s5 + $0x78] sm:$0xff]  ;;  %v2724_v39 = vld [vmem:[%s3420_s1 + $0x28] sm:$0xff]  }
   0xd   :  { %708 = vperm.xlu0 %2709, %v702_v16   ;;  %v1589_v40 = vld [vmem:[%s3423_s7] sm:$0xff]  ;;  %v2725_v42 = vld [vmem:[%s3420_s1 + $0x30] sm:$0xff]   ;;  %v2726_v43 = vld [vmem:[%s3420_s1 + $0x38] sm:$0xff]  }
   0xe   :  { %v1582_v41 = vld [vmem:[%s3424_s6] sm:$0xff]  ;;  %v44_v44 = vld [vmem:[%s3421_s0 + $0x10] sm:$0xff]  ;;  %v45_v45 = vld [vmem:[%s3421_s0 + $0x18] sm:$0xff] }
   0xf   :  { %2337 = vmatpush3.bf16.msra.mxu0 %v2714_v4  ;;  %v55_v46 = vpack.c.bf16 %v45_v45, %v44_v44  ;;  %v2727_v47 = vld [vmem:[%s3425_s2] sm:$0xff]   ;;  %v52_v49 = vld [vmem:[%s3421_s0 + $0x50] sm:$0xff]  ;;  %v53_v53 = vld [vmem:[%s3421_s0 + $0x58] sm:$0xff] }
  0x10   :  { %2338 = vmatprep.subr.bf16.mxu0 %v2715_v8  ;;  %723 = vperm.xlu1 %2710, %v705_v24   ;;  %v50_v51 = vld [vmem:[%s3421_s0 + $0x40] sm:$0xff]  ;;  %v51_v56 = vld [vmem:[%s3421_s0 + $0x48] sm:$0xff]  ;;  %v2733_v14 = vld [vmem:[%s3420_s1 + $0x50] sm:$0xff]  }
  0x11   :  { %718 = vperm.xlu0 %2709, %v704_v23   ;;  %2374 = vmatprep.mubr.msk.bf16.mxu1 %vm368_vm0, %v2727_v47  ;;  %v2731_v10 = vld [vmem:[%s3420_s1 + $0x40] sm:$0xff]   ;;  %v2728_v11 = vld [vmem:[%s3425_s2 + $0x8] sm:$0xff]   ;;  %v2734_v16 = vld [vmem:[%s3420_s1 + $0x58] sm:$0xff]  }
  0x12   :  { %v2732_v13 = vld [vmem:[%s3420_s1 + $0x48] sm:$0xff]   ;;  %v2735_v17 = vld [vmem:[%s3420_s1 + $0x60] sm:$0xff]   ;;  %v2739_v21 = vld [vmem:[%s3420_s1 + $0x70] sm:$0xff]  }
  0x13   :  { %2339 = vmatpush3.bf16.msra.mxu0 %v2715_v8  ;;  %v2736_v18 = vld [vmem:[%s3425_s2 + $0x20] sm:$0xff]   ;;  %v2737_v19 = vld [vmem:[%s3420_s1 + $0x68] sm:$0xff]   ;;  %v2740_v22 = vld [vmem:[%s3420_s1 + $0x78] sm:$0xff]  }
  0x14   :  { %2340 = vmatprep.subr.bf16.mxu0 %v2716_v9  ;;  %1126 = vperm.xlu1 %2710, %v1116_v29   ;;  %v2741_v23 = vld [vmem:[%s3420_s1] sm:$0xff]  }
  0x15   :  { %1121 = vperm.xlu0 %2709, %v1115_v28  }
  0x17   :  { %2341 = vmatpush3.bf16.msra.mxu0 %v2716_v9 }
  0x18   :  { %2342 = vmatprep.subr.bf16.mxu0 %v2717_v12  ;;  %1136 = vperm.xlu1 %2710, %v1118_v32  }
  0x19   :  { %1131 = vperm.xlu0 %2709, %v1117_v31  }
  0x1b   :  { %2343 = vmatpush3.bf16.msra.mxu0 %v2717_v12  ;;  %v2729_v12 = vld [vmem:[%s3425_s2 + $0x10] sm:$0xff]  }
  0x1c   :  { %2344 = vmatprep.subr.bf16.mxu0 %v2718_v15  ;;  %1539 = vperm.xlu1 %2710, %v1529_v35  }
  0x1d   :  { %1534 = vperm.xlu0 %2709, %v1528_v34  }
  0x1f   :  { %2345 = vmatpush3.bf16.msra.mxu0 %v2718_v15  ;;  %v2730_v15 = vld [vmem:[%s3425_s2 + $0x18] sm:$0xff]  }
  0x20   :  { %2350 = vmatprep.subr.bf16.mxu0 %v2719_v20  ;;  %1549 = vperm.xlu1 %2710, %v1531_v38   ;;  %v2744_v38 = vld [vmem:[%s3420_s1 + $0x18] sm:$0xff]  }
  0x21   :  { %1544 = vperm.xlu0 %2709, %v1530_v37   ;;  %v2743_v37 = vld [vmem:[%s3420_s1 + $0x10] sm:$0xff]  }
  0x22   :  { %2347 = vmatmul.mubr.bf16.vlgmr.msra.gmra.mrb[0].mxu0 %v73_v25 }
  0x23   :  { %2351 = vmatpush3.bf16.msra.mxu0 %v2719_v20  ;;  %2366 = vmatprep.mubr.bf16.mxu0 %v54_v27  ;;  %v2738_v20 = vld [vmem:[%s3425_s2 + $0x28] sm:$0xff]  }
  0x24   :  { %2352 = vmatprep.subr.bf16.mxu0 %v2720_v26  ;;  %1584 = vperm.xlu1 %2710, %v1582_v41   ;;  %v2747_v41 = vld [vmem:[%s3420_s1 + $0x30] sm:$0xff]  }
  0x25   :  { %1591 = vperm.xlu0 %2709, %v1589_v40   ;;  %v2746_v40 = vld [vmem:[%s3420_s1 + $0x28] sm:$0xff]  }
  0x27   :  { %2353 = vmatpush3.bf16.msra.mxu0 %v2720_v26 }
  0x28   :  { %2354 = vmatprep.subr.bf16.mxu0 %v2721_v30 }
  0x2b   :  { %2355 = vmatpush3.bf16.msra.mxu0 %v2721_v30 }
  0x2c   :  { %2356 = vmatprep.subr.bf16.mxu0 %v2722_v33 }
  0x2f   :  { %2357 = vmatpush3.bf16.msra.mxu0 %v2722_v33 }
  0x30   :  { %2358 = vmatprep.subr.bf16.mxu0 %v2723_v36 }
  0x33   :  { %2359 = vmatpush3.bf16.msra.mxu0 %v2723_v36  ;;  %v2742_v36 = vld [vmem:[%s3420_s1 + $0x8] sm:$0xff]  }
  0x34   :  { %2360 = vmatprep.subr.bf16.mxu0 %v2724_v39 }
  0x37   :  { %2361 = vmatpush3.bf16.msra.mxu0 %v2724_v39  ;;  %v2745_v39 = vld [vmem:[%s3420_s1 + $0x20] sm:$0xff]  }
  0x38   :  { %2362 = vmatprep.subr.bf16.mxu0 %v2725_v42 }
  0x3b   :  { %2363 = vmatpush3.bf16.msra.mxu0 %v2725_v42  ;;  %v2748_v42 = vld [vmem:[%s3420_s1 + $0x38] sm:$0xff]  }
  0x3c   :  { %2364 = vmatprep.subr.bf16.mxu0 %v2726_v43 }
  0x3f   :  { %2365 = vmatpush3.bf16.msra.mxu0 %v2726_v43  ;;  %v2749_v43 = vld [vmem:[%s3426_s3] sm:$0xff]  }
  0x42   :  { %2367 = vmatmul.mubr.bf16.vlgmr.msra.gmra.mrb[0].mxu0 %v55_v46 }
  0x43   :  { %2430 = vmatprep.mubr.msk.bf16.mxu0 %vm368_vm0, %v2749_v43 }
  0x83   :  { %v305_v48 = vpop.permute.xlu1 %304 }
  0x84   :  { %v295_v50 = vpop.permute.xlu0 %294 }
  0x87   :  { %v310_v62 = vpop.permute.xlu1 %309 }
  0x88   :  { %v300_v1 = vpop.permute.xlu0 %299 }
  0x8b   :  { %v714_v45 = vpop.permute.xlu1 %713 }
  0x8c   :  { %v709_v44 = vpop.permute.xlu0 %708 }
  0x90   :  { %v719_v46 = vpop.permute.xlu0 %718 }
 0x115   :  { %v2368_v52 = vpop.f32.mrb[0].mxu0 }
 0x116   :  { %v286_v54 = vadd.f32 %v2368_v52, %v52_v49  ;;  %v269_v55 = vpop.f32.mrb[1].mxu0 }
 0x117   :  { %v284_v57 = vadd.f32 %v269_v55, %v50_v51  ;;  %v2369_v58 = vpop.f32.mrb[2].mxu0 }
 0x118   :  { %v314_v59 = vadd.f32 %v305_v48, %v286_v54  ;;  %v287_v60 = vadd.f32 %v2369_v58, %v53_v53  ;;  %v272_v61 = vpop.f32.mrb[3].mxu0 }
 0x119   :  { %v312_v63 = vadd.f32 %v295_v50, %v284_v57  ;;  %v285_v0 = vadd.f32 %v272_v61, %v51_v56  ;;  %v724_v50 = vpop.permute.xlu1 %723 }
 0x11a   :  { %2817 = vtanh.f32 %v314_v59  ;;  %v315_v2 = vadd.f32 %v310_v62, %v287_v60  ;;  %v2753_v62 = vld [vmem:[%s3420_s1 + $0x40] sm:$0xff]  }
 0x11b   :  { %2819 = vtanh.f32 %v312_v63  ;;  %v313_v3 = vadd.f32 %v300_v1, %v285_v0  ;;  %v2750_v63 = vld [vmem:[%s3426_s3 + $0x8] sm:$0xff]   ;;  %v2751_v0 = vld [vmem:[%s3426_s3 + $0x10] sm:$0xff]  }
 0x11c   :  { %2821 = vtanh.f32 %v315_v2  ;;  %v2754_v1 = vld [vmem:[%s3420_s1 + $0x48] sm:$0xff]   ;;  %v2755_v2 = vld [vmem:[%s3420_s1 + $0x50] sm:$0xff]  }
 0x11d   :  { %2823 = vtanh.f32 %v313_v3  ;;  %v2752_v3 = vld [vmem:[%s3426_s3 + $0x18] sm:$0xff]  }
 0x124   :  { %v2818_v4 = vpop.eup %2817 }
 0x125   :  { %v2820_v5 = vpop.eup %2819 }
 0x126   :  { %v2822_v6 = vpop.eup %2821 }
 0x127   :  { %v2824_v7 = vpop.eup %2823  ;;  %v3061_v8 = vpack.c.bf16 %v2822_v6, %v2818_v4  ;;  %v2756_v4 = vld [vmem:[%s3420_s1 + $0x58] sm:$0xff]   ;;  %v2758_v6 = vld [vmem:[%s3426_s3 + $0x20] sm:$0xff]  }
 0x128   :  { %v3063_v9 = vpack.c.bf16 %v2824_v7, %v2820_v5  ;;  %v2757_v5 = vld [vmem:[%s3420_s1 + $0x60] sm:$0xff]   ;;  %v2759_v7 = vld [vmem:[%s3420_s1 + $0x68] sm:$0xff]  }
 0x12a   :  { %2370 = vmatprep.subr.bf16.mxu1 %v3063_v9 }
 0x12b   :  { %2371 = vmatpush3.bf16.msra.mxu1 %v3063_v9 }
 0x12c   :  { %2372 = vmatprep.subr.bf16.mxu1 %v3061_v8 }
 0x12f   :  { %2373 = vmatpush3.bf16.msra.mxu1 %v3061_v8 }
 0x130   :  { %2386 = vmatprep.subr.bf16.mxu1 %v2731_v10 }
 0x132   :  { %2375 = vmatmul.mubr.msk.bf16.vlgmr.msra.gmra.mrb[0].mxu1 %vm368_vm0, %v2728_v11  ;;  %v2761_v11 = vld [vmem:[%s3420_s1 + $0x70] sm:$0xff]  }
 0x133   :  { %2378 = vmatprep.mubr.msk.bf16.mxu1 %vm368_vm0, %v2729_v12  ;;  %2387 = vmatpush3.bf16.msra.mxu1 %v2731_v10  ;;  %v2760_v10 = vld [vmem:[%s3426_s3 + $0x28] sm:$0xff]   ;;  %v2762_v12 = vld [vmem:[%s3420_s1 + $0x78] sm:$0xff]  }
 0x134   :  { %2388 = vmatprep.subr.bf16.mxu1 %v2732_v13 }
 0x137   :  { %2389 = vmatpush3.bf16.msra.mxu1 %v2732_v13  ;;  %v2763_v13 = vld [vmem:[%s3420_s1] sm:$0xff]  }
 0x138   :  { %2390 = vmatprep.subr.bf16.mxu1 %v2733_v14 }
 0x13a   :  { %2379 = vmatmul.mubr.msk.bf16.gmra.mrb[4].mxu1 %vm368_vm0, %v2730_v15 }
 0x13b   :  { %2391 = vmatpush3.bf16.msra.mxu1 %v2733_v14  ;;  %2382 = vmatprep.mubr.msk.bf16.mxu1 %vm368_vm0, %v2736_v18 }
 0x13c   :  { %2392 = vmatprep.subr.bf16.mxu1 %v2734_v16 }
 0x13f   :  { %2393 = vmatpush3.bf16.msra.mxu1 %v2734_v16 }
 0x140   :  { %2394 = vmatprep.subr.bf16.mxu1 %v2735_v17 }
 0x142   :  { %2383 = vmatmul.mubr.msk.bf16.gmra.mrb[8].mxu1 %vm368_vm0, %v2738_v20 }
 0x143   :  { %2395 = vmatpush3.bf16.msra.mxu1 %v2735_v17 }
 0x144   :  { %2396 = vmatprep.subr.bf16.mxu1 %v2737_v19 }
 0x147   :  { %2397 = vmatpush3.bf16.msra.mxu1 %v2737_v19 }
 0x148   :  { %2398 = vmatprep.subr.bf16.mxu1 %v2739_v21 }
 0x14b   :  { %2399 = vmatpush3.bf16.msra.mxu1 %v2739_v21 }
 0x14c   :  { %2400 = vmatprep.subr.bf16.mxu1 %v2740_v22 }
 0x14f   :  { %2401 = vmatpush3.bf16.msra.mxu1 %v2740_v22 }
 0x150   :  { %2406 = vmatprep.subr.bf16.mxu1 %v2741_v23 }
 0x205   :  { %v2376_v24 = vpop.f32.mrb[0].mxu1 }
 0x206   :  { %v421_v25 = vpop.f32.mrb[1].mxu1 }
 0x207   :  { %v2377_v26 = vpop.f32.mrb[2].mxu1 }
 0x208   :  { %v469_v27 = vpack.c.bf16 %v2377_v26, %v2376_v24  ;;  %v424_v28 = vpop.f32.mrb[3].mxu1  ;;  %v2764_v26 = vld [vmem:[%s3420_s1 + $0x8] sm:$0xff]  }
 0x209   :  { %v468_v29 = vpack.c.bf16 %v424_v28, %v421_v25  ;;  %v2766_v28 = vld [vmem:[%s3420_s1 + $0x18] sm:$0xff]  }
 0x20d   :  { %v2380_v30 = vpop.f32.mrb[4].mxu1 }
 0x20e   :  { %v437_v31 = vpop.f32.mrb[5].mxu1 }
 0x20f   :  { %v2381_v32 = vpop.f32.mrb[6].mxu1 }
 0x210   :  { %v487_v33 = vpack.c.bf16 %v2381_v32, %v2380_v30  ;;  %v440_v34 = vpop.f32.mrb[7].mxu1  ;;  %v2768_v30 = vld [vmem:[%s3420_s1 + $0x28] sm:$0xff]   ;;  %v2770_v32 = vld [vmem:[%s3420_s1 + $0x38] sm:$0xff]  }
 0x211   :  { %v486_v35 = vpack.c.bf16 %v440_v34, %v437_v31  ;;  %v2769_v31 = vld [vmem:[%s3420_s1 + $0x30] sm:$0xff]   ;;  %v2771_v34 = vld [vmem:[%s3427_s4] sm:$0xff]  }
 0x213   :  { %2402 = vmatprep.mubr.bf16.mxu1 %v486_v35  ;;  %v1122_v35 = vpop.permute.xlu0 %1121 }
 0x214   :  { %2403 = vmatmul.mubr.bf16.vlgmr.msra.gmra.mrb[8].mxu1 %v487_v33  ;;  %v2850_v33 = vmov 0.0|0.0  }
 0x215   :  { %2407 = vmatpush3.bf16.msra.mxu1 %v2741_v23  ;;  %2422 = vmatprep.mubr.bf16.mxu1 %v468_v29  ;;  %v2767_v29 = vld [vmem:[%s3420_s1 + $0x20] sm:$0xff]  }
 0x216   :  { %2408 = vmatprep.subr.bf16.mxu1 %v2742_v36 }
 0x219   :  { %2409 = vmatpush3.bf16.msra.mxu1 %v2742_v36  ;;  %v1127_v36 = vpop.permute.xlu1 %1126 }
 0x21a   :  { %2410 = vmatprep.subr.bf16.mxu1 %v2743_v37 }
 0x21d   :  { %2411 = vmatpush3.bf16.msra.mxu1 %v2743_v37  ;;  %v1132_v37 = vpop.permute.xlu0 %1131 }
 0x21e   :  { %2412 = vmatprep.subr.bf16.mxu1 %v2744_v38 }
 0x221   :  { %2413 = vmatpush3.bf16.msra.mxu1 %v2744_v38 }
 0x222   :  { %2414 = vmatprep.subr.bf16.mxu1 %v2745_v39 }
 0x225   :  { %2415 = vmatpush3.bf16.msra.mxu1 %v2745_v39 }
 0x226   :  { %2416 = vmatprep.subr.bf16.mxu1 %v2746_v40 }
 0x229   :  { %2417 = vmatpush3.bf16.msra.mxu1 %v2746_v40 }
 0x22a   :  { %2418 = vmatprep.subr.bf16.mxu1 %v2747_v41 }
 0x22d   :  { %2419 = vmatpush3.bf16.msra.mxu1 %v2747_v41  ;;  %v1137_v41 = vpop.permute.xlu1 %1136 }
 0x22e   :  { %2420 = vmatprep.subr.bf16.mxu1 %v2748_v42 }
 0x231   :  { %2421 = vmatpush3.bf16.msra.mxu1 %v2748_v42 }
 0x234   :  { %2423 = vmatmul.mubr.bf16.vlgmr.msra.gmra.mrb[8].mxu1 %v469_v27  ;;  %v2765_v27 = vld [vmem:[%s3420_s1 + $0x10] sm:$0xff]  }
 0x235   :  { %2486 = vmatprep.mubr.msk.bf16.mxu1 %vm368_vm0, %v2771_v34 }
 0x307   :  { %v2424_v47 = vpop.f32.mrb[8].mxu1 }
 0x308   :  { %v728_v48 = vadd.f32 %v2424_v47, %v719_v46  ;;  %v683_v49 = vpop.f32.mrb[9].mxu1 }
 0x309   :  { %v726_v51 = vadd.f32 %v709_v44, %v683_v49  ;;  %v2425_v52 = vpop.f32.mrb[10].mxu1 }
 0x30a   :  { %2825 = vtanh.f32 %v728_v48  ;;  %v729_v53 = vadd.f32 %v2425_v52, %v724_v50  ;;  %v686_v54 = vpop.f32.mrb[11].mxu1 }
 0x30b   :  { %2827 = vtanh.f32 %v726_v51  ;;  %v727_v55 = vadd.f32 %v714_v45, %v686_v54  ;;  %v2772_v54 = vld [vmem:[%s3427_s4 + $0x8] sm:$0xff]  }
 0x30c   :  { %2829 = vtanh.f32 %v729_v53  ;;  %v2775_v53 = vld [vmem:[%s3420_s1 + $0x40] sm:$0xff]  }
 0x30d   :  { %2831 = vtanh.f32 %v727_v55  ;;  %v2773_v55 = vld [vmem:[%s3427_s4 + $0x10] sm:$0xff]  }
 0x314   :  { %v2826_v56 = vpop.eup %2825 }
 0x315   :  { %v2828_v57 = vpop.eup %2827 }
 0x316   :  { %v2830_v58 = vpop.eup %2829 }
 0x317   :  { %v2832_v59 = vpop.eup %2831  ;;  %v3141_v60 = vpack.c.bf16 %v2830_v58, %v2826_v56  ;;  %v2776_v56 = vld [vmem:[%s3420_s1 + $0x48] sm:$0xff]   ;;  %v2774_v58 = vld [vmem:[%s3427_s4 + $0x18] sm:$0xff]  }
 0x318   :  { %v3143_v61 = vpack.c.bf16 %v2832_v59, %v2828_v57  ;;  %v2777_v57 = vld [vmem:[%s3420_s1 + $0x50] sm:$0xff]   ;;  %v2778_v59 = vld [vmem:[%s3420_s1 + $0x58] sm:$0xff]  }
 0x31a   :  { %2426 = vmatprep.subr.bf16.mxu0 %v3143_v61 }
 0x31b   :  { %2427 = vmatpush3.bf16.msra.mxu0 %v3143_v61 }
 0x31c   :  { %2428 = vmatprep.subr.bf16.mxu0 %v3141_v60 }
 0x31f   :  { %2429 = vmatpush3.bf16.msra.mxu0 %v3141_v60 }
 0x320   :  { %2442 = vmatprep.subr.bf16.mxu0 %v2753_v62 }
 0x322   :  { %2431 = vmatmul.mubr.msk.bf16.vlgmr.msra.gmra.mrb[4].mxu0 %vm368_vm0, %v2750_v63  ;;  %v2780_v63 = vld [vmem:[%s3427_s4 + $0x20] sm:$0xff]  }
 0x323   :  { %2434 = vmatprep.mubr.msk.bf16.mxu0 %vm368_vm0, %v2751_v0  ;;  %2443 = vmatpush3.bf16.msra.mxu0 %v2753_v62  ;;  %v2779_v62 = vld [vmem:[%s3420_s1 + $0x60] sm:$0xff]   ;;  %v2781_v0 = vld [vmem:[%s3420_s1 + $0x68] sm:$0xff]  }
 0x324   :  { %2444 = vmatprep.subr.bf16.mxu0 %v2754_v1 }
 0x327   :  { %2445 = vmatpush3.bf16.msra.mxu0 %v2754_v1  ;;  %v2782_v1 = vld [vmem:[%s3427_s4 + $0x28] sm:$0xff]  }
 0x328   :  { %2446 = vmatprep.subr.bf16.mxu0 %v2755_v2 }
 0x32a   :  { %2435 = vmatmul.mubr.msk.bf16.gmra.mrb[8].mxu0 %vm368_vm0, %v2752_v3  ;;  %v2784_v3 = vld [vmem:[%s3420_s1 + $0x78] sm:$0xff]  }
 0x32b   :  { %2447 = vmatpush3.bf16.msra.mxu0 %v2755_v2  ;;  %2438 = vmatprep.mubr.msk.bf16.mxu0 %vm368_vm0, %v2758_v6  ;;  %v2783_v2 = vld [vmem:[%s3420_s1 + $0x70] sm:$0xff]  }
 0x32c   :  { %2448 = vmatprep.subr.bf16.mxu0 %v2756_v4 }
 0x32f   :  { %2449 = vmatpush3.bf16.msra.mxu0 %v2756_v4  ;;  %v2785_v4 = vld [vmem:[%s3420_s1] sm:$0xff]  }
 0x330   :  { %2450 = vmatprep.subr.bf16.mxu0 %v2757_v5 }
 0x332   :  { %2439 = vmatmul.mubr.msk.bf16.gmra.mrb[12].mxu0 %vm368_vm0, %v2760_v10 }
 0x333   :  { %2451 = vmatpush3.bf16.msra.mxu0 %v2757_v5 }
 0x334   :  { %2452 = vmatprep.subr.bf16.mxu0 %v2759_v7 }
 0x337   :  { %2453 = vmatpush3.bf16.msra.mxu0 %v2759_v7 }
 0x338   :  { %2454 = vmatprep.subr.bf16.mxu0 %v2761_v11 }
 0x33b   :  { %2455 = vmatpush3.bf16.msra.mxu0 %v2761_v11 }
 0x33c   :  { %2456 = vmatprep.subr.bf16.mxu0 %v2762_v12 }
 0x33f   :  { %2457 = vmatpush3.bf16.msra.mxu0 %v2762_v12 }
 0x340   :  { %2462 = vmatprep.subr.bf16.mxu0 %v2763_v13 }
 0x3f5   :  { %v2432_v14 = vpop.f32.mrb[4].mxu0 }
 0x3f6   :  { %v834_v15 = vpop.f32.mrb[5].mxu0 }
 0x3f7   :  { %v2433_v16 = vpop.f32.mrb[6].mxu0 }
 0x3f8   :  { %v882_v17 = vpack.c.bf16 %v2433_v16, %v2432_v14  ;;  %v837_v18 = vpop.f32.mrb[7].mxu0 }
 0x3f9   :  { %v881_v19 = vpack.c.bf16 %v837_v18, %v834_v15 }
 0x3fd   :  { %v2436_v20 = vpop.f32.mrb[8].mxu0 }
 0x3fe   :  { %v850_v21 = vpop.f32.mrb[9].mxu0 }
 0x3ff   :  { %v2437_v22 = vpop.f32.mrb[10].mxu0 }
 0x400   :  { %v900_v23 = vpack.c.bf16 %v2437_v22, %v2436_v20  ;;  %v853_v24 = vpop.f32.mrb[11].mxu0  ;;  %v2787_v20 = vld [vmem:[%s3420_s1 + $0x10] sm:$0xff]   ;;  %v2789_v22 = vld [vmem:[%s3420_s1 + $0x20] sm:$0xff]  }
 0x401   :  { %v899_v25 = vpack.c.bf16 %v853_v24, %v850_v21  ;;  %v2788_v21 = vld [vmem:[%s3420_s1 + $0x18] sm:$0xff]   ;;  %v2791_v24 = vld [vmem:[%s3420_s1 + $0x30] sm:$0xff]  }
 0x403   :  { %2458 = vmatprep.mubr.bf16.mxu0 %v899_v25  ;;  %v2792_v25 = vld [vmem:[%s3420_s1 + $0x38] sm:$0xff]  }
 0x404   :  { %2459 = vmatmul.mubr.bf16.vlgmr.msra.gmra.mrb[12].mxu0 %v900_v23  ;;  %v2790_v23 = vld [vmem:[%s3420_s1 + $0x28] sm:$0xff]  }
 0x405   :  { %2463 = vmatpush3.bf16.msra.mxu0 %v2763_v13  ;;  %2478 = vmatprep.mubr.bf16.mxu0 %v881_v19  ;;  %v2786_v19 = vld [vmem:[%s3420_s1 + $0x8] sm:$0xff]  }
 0x406   :  { %2464 = vmatprep.subr.bf16.mxu0 %v2764_v26 }
 0x409   :  { %2465 = vmatpush3.bf16.msra.mxu0 %v2764_v26 }
 0x40a   :  { %2466 = vmatprep.subr.bf16.mxu0 %v2765_v27 }
 0x40d   :  { %2467 = vmatpush3.bf16.msra.mxu0 %v2765_v27 }
 0x40e   :  { %2468 = vmatprep.subr.bf16.mxu0 %v2766_v28 }
 0x411   :  { %2469 = vmatpush3.bf16.msra.mxu0 %v2766_v28 }
 0x412   :  { %2470 = vmatprep.subr.bf16.mxu0 %v2767_v29 }
 0x415   :  { %2471 = vmatpush3.bf16.msra.mxu0 %v2767_v29 }
 0x416   :  { %2472 = vmatprep.subr.bf16.mxu0 %v2768_v30 }
 0x419   :  { %2473 = vmatpush3.bf16.msra.mxu0 %v2768_v30 }
 0x41a   :  { %2474 = vmatprep.subr.bf16.mxu0 %v2769_v31 }
 0x41d   :  { %2475 = vmatpush3.bf16.msra.mxu0 %v2769_v31 }
 0x41e   :  { %2476 = vmatprep.subr.bf16.mxu0 %v2770_v32 }
 0x421   :  { %2477 = vmatpush3.bf16.msra.mxu0 %v2770_v32 }
 0x422   :  { %2628 = vmatprep.subr.bf16.mxu0 %v2850_v33 }
 0x424   :  { %2479 = vmatmul.mubr.bf16.vlgmr.msra.gmra.mrb[12].mxu0 %v882_v17 }
 0x42a   :  { %2630 = vmatpush3.bf16.xpose.msra.mxu0 %v3063_v9 }
 0x42b   :  { %2631 = vmatprep.subr.bf16.mxu0 %v2850_v33 }
 0x432   :  { %2633 = vmatpush3.bf16.xpose.msra.mxu0 %v3061_v8 }
 0x433   :  { %2634 = vmatprep.subr.bf16.mxu0 %v2850_v33 }
 0x43a   :  { %2636 = vmatpush3.bf16.xpose.msra.mxu0 %v3143_v61 }
 0x43b   :  { %2637 = vmatprep.subr.bf16.mxu0 %v2850_v33 }
 0x442   :  { %2639 = vmatpush3.bf16.xpose.msra.mxu0 %v3141_v60 }
 0x443   :  { %2640 = vmatprep.subr.bf16.mxu0 %v2850_v33 }
 0x4f7   :  { %v2480_v38 = vpop.f32.mrb[12].mxu0 }
 0x4f8   :  { %v1141_v39 = vadd.f32 %v2480_v38, %v1132_v37  ;;  %v1096_v40 = vpop.f32.mrb[13].mxu0 }
 0x4f9   :  { %v1139_v42 = vadd.f32 %v1122_v35, %v1096_v40  ;;  %v2481_v43 = vpop.f32.mrb[14].mxu0 }
 0x4fa   :  { %2833 = vtanh.f32 %v1141_v39  ;;  %v1142_v44 = vadd.f32 %v2481_v43, %v1137_v41  ;;  %v1099_v45 = vpop.f32.mrb[15].mxu0  ;;  %v1580_v43 = vlaneseq }
 0x4fb   :  { %2835 = vtanh.f32 %v1139_v42  ;;  %v1140_v46 = vadd.f32 %v1127_v36, %v1099_v45  ;;  %v2793_v42 = vld [vmem:[%s3428_s8 + $0x40] sm:$0xff]  }
 0x4fc   :  { %2837 = vtanh.f32 %v1142_v44  ;;  %v1581_v44 = vand.u32 127, %v1580_v43 }
 0x4fd   :  { %2839 = vtanh.f32 %v1140_v46 }
 0x504   :  { %v2834_v47 = vpop.eup %2833 }
 0x505   :  { %v2836_v48 = vpop.eup %2835 }
 0x506   :  { %v2838_v49 = vpop.eup %2837 }
 0x507   :  { %v2840_v50 = vpop.eup %2839  ;;  %v3230_v51 = vpack.c.bf16 %v2838_v49, %v2834_v47  ;;  %v2794_v47 = vld [vmem:[%s3428_s8] sm:$0xff]   ;;  %v2796_v49 = vld [vmem:[%s3428_s8 + $0x8] sm:$0xff]  }
 0x508   :  { %v3232_v52 = vpack.c.bf16 %v2840_v50, %v2836_v48  ;;  %v2853_v48 = vmov 1.0   ;;  %v2797_v50 = vld [vmem:[%s3428_s8 + $0x50] sm:$0xff]  }
 0x50a   :  { %2482 = vmatprep.subr.bf16.mxu1 %v3232_v52  ;;  %2642 = vmatpush3.bf16.xpose.msra.mxu0 %v3232_v52 }
 0x50b   :  { %2483 = vmatpush3.bf16.msra.mxu1 %v3232_v52  ;;  %2643 = vmatprep.subr.bf16.mxu0 %v2850_v33 }
 0x50c   :  { %2484 = vmatprep.subr.bf16.mxu1 %v3230_v51 }
 0x50f   :  { %2485 = vmatpush3.bf16.msra.mxu1 %v3230_v51 }
 0x510   :  { %2498 = vmatprep.subr.bf16.mxu1 %v2775_v53 }
 0x512   :  { %2487 = vmatmul.mubr.msk.bf16.vlgmr.msra.gmra.mrb[12].mxu1 %vm368_vm0, %v2772_v54  ;;  %2645 = vmatpush3.bf16.xpose.msra.mxu0 %v3230_v51  ;;  %v2801_v54 = vld [vmem:[%s3428_s8 + $0x60] sm:$0xff]  }
 0x513   :  { %2490 = vmatprep.mubr.msk.bf16.mxu1 %vm368_vm0, %v2773_v55  ;;  %2499 = vmatpush3.bf16.msra.mxu1 %v2775_v53  ;;  %v2800_v53 = vld [vmem:[%s3428_s8 + $0x18] sm:$0xff]   ;;  %v2802_v55 = vld [vmem:[%s3428_s8 + $0x20] sm:$0xff]  }
 0x514   :  { %2500 = vmatprep.subr.bf16.mxu1 %v2776_v56  ;;  %2646 = vmatprep.subr.bf16.mxu0 %v2850_v33 }
 0x517   :  { %2501 = vmatpush3.bf16.msra.mxu1 %v2776_v56  ;;  %v2803_v56 = vld [vmem:[%s3428_s8 + $0x68] sm:$0xff]  }
 0x518   :  { %2502 = vmatprep.subr.bf16.mxu1 %v2777_v57 }
 0x51a   :  { %2491 = vmatmul.mubr.msk.bf16.gmra.mrb[16].mxu1 %vm368_vm0, %v2774_v58  ;;  %v2805_v58 = vld [vmem:[%s3428_s8 + $0x70] sm:$0xff]  }
 0x51b   :  { %2503 = vmatpush3.bf16.msra.mxu1 %v2777_v57  ;;  %2494 = vmatprep.mubr.msk.bf16.mxu1 %vm368_vm0, %v2780_v63  ;;  %v2804_v57 = vld [vmem:[%s3428_s8 + $0x28] sm:$0xff]   ;;  %v2808_v63 = vld [vmem:[%s3428_s8 + $0x38] sm:$0xff]  }
 0x51c   :  { %2504 = vmatprep.subr.bf16.mxu1 %v2778_v59 }
 0x51f   :  { %2505 = vmatpush3.bf16.msra.mxu1 %v2778_v59  ;;  %v2806_v59 = vld [vmem:[%s3428_s8 + $0x30] sm:$0xff]  }
 0x520   :  { %2506 = vmatprep.subr.bf16.mxu1 %v2779_v62 }
 0x522   :  { %2495 = vmatmul.mubr.msk.bf16.gmra.mrb[20].mxu1 %vm368_vm0, %v2782_v1  ;;  %v2810_v1 = vld [vmem:[%s3429_s10 + $0x8] sm:$0xff]  }
 0x523   :  { %2507 = vmatpush3.bf16.msra.mxu1 %v2779_v62  ;;  %v2807_v62 = vld [vmem:[%s3428_s8 + $0x78] sm:$0xff]  }
 0x524   :  { %2508 = vmatprep.subr.bf16.mxu1 %v2781_v0 }
 0x527   :  { %2509 = vmatpush3.bf16.msra.mxu1 %v2781_v0  ;;  %v2809_v0 = vld [vmem:[%s3429_s10] sm:$0xff]  }
 0x528   :  { %2510 = vmatprep.subr.bf16.mxu1 %v2783_v2 }
 0x52b   :  { %2511 = vmatpush3.bf16.msra.mxu1 %v2783_v2  ;;  %v2811_v2 = vld [vmem:[%s3429_s10 + $0x10] sm:$0xff]  }
 0x52c   :  { %2512 = vmatprep.subr.bf16.mxu1 %v2784_v3 }
 0x52f   :  { %2513 = vmatpush3.bf16.msra.mxu1 %v2784_v3  ;;  %v2812_v3 = vld [vmem:[%s3429_s10 + $0x18] sm:$0xff]  }
 0x530   :  { %2518 = vmatprep.subr.bf16.mxu1 %v2785_v4 }
 0x5e5   :  { %v2488_v5 = vpop.f32.mrb[12].mxu1 }
 0x5e6   :  { %v1247_v6 = vpop.f32.mrb[13].mxu1 }
 0x5e7   :  { %v2489_v7 = vpop.f32.mrb[14].mxu1 }
 0x5e8   :  { %v1295_v10 = vpack.c.bf16 %v2489_v7, %v2488_v5  ;;  %v1250_v11 = vpop.f32.mrb[15].mxu1  ;;  %v2814_v5 = vld [vmem:[%s3429_s10 + $0x28] sm:$0xff]  }
 0x5e9   :  { %v1294_v12 = vpack.c.bf16 %v1250_v11, %v1247_v6 }
 0x5ed   :  { %v2492_v13 = vpop.f32.mrb[16].mxu1 }
 0x5ee   :  { %v1263_v14 = vpop.f32.mrb[17].mxu1 }
 0x5ef   :  { %v2493_v15 = vpop.f32.mrb[18].mxu1 }
 0x5f0   :  { %v1313_v16 = vpack.c.bf16 %v2493_v15, %v2492_v13  ;;  %v1266_v17 = vpop.f32.mrb[19].mxu1  ;;  %v2816_v15 = vld [vmem:[%s3429_s10 + $0x38] sm:$0xff]  }
 0x5f1   :  { %v1312_v18 = vpack.c.bf16 %v1266_v17, %v1263_v14  ;;  %v2815_v14 = vld [vmem:[%s3429_s10 + $0x30] sm:$0xff]   ;;  %v2135_v17 = vld [vmem:[%s3430_s9] ss:$0 sm:$0xff] }
 0x5f3   :  { %2514 = vmatprep.mubr.bf16.mxu1 %v1312_v18 }
 0x5f4   :  { %2515 = vmatmul.mubr.bf16.vlgmr.msra.gmra.mrb[20].mxu1 %v1313_v16 }
 0x5f5   :  { %2519 = vmatpush3.bf16.msra.mxu1 %v2785_v4  ;;  %2534 = vmatprep.mubr.bf16.mxu1 %v1294_v12  ;;  %v2813_v4 = vld [vmem:[%s3429_s10 + $0x20] sm:$0xff]  }
 0x5f6   :  { %2520 = vmatprep.subr.bf16.mxu1 %v2786_v19 }
 0x5f9   :  { %2521 = vmatpush3.bf16.msra.mxu1 %v2786_v19 }
 0x5fa   :  { %2522 = vmatprep.subr.bf16.mxu1 %v2787_v20 }
 0x5fd   :  { %2523 = vmatpush3.bf16.msra.mxu1 %v2787_v20 }
 0x5fe   :  { %2524 = vmatprep.subr.bf16.mxu1 %v2788_v21 }
 0x601   :  { %2525 = vmatpush3.bf16.msra.mxu1 %v2788_v21 }
 0x602   :  { %2526 = vmatprep.subr.bf16.mxu1 %v2789_v22 }
 0x605   :  { %2527 = vmatpush3.bf16.msra.mxu1 %v2789_v22 }
 0x606   :  { %2528 = vmatprep.subr.bf16.mxu1 %v2790_v23 }
 0x609   :  { %2529 = vmatpush3.bf16.msra.mxu1 %v2790_v23 }
 0x60a   :  { %2530 = vmatprep.subr.bf16.mxu1 %v2791_v24 }
 0x60d   :  { %2531 = vmatpush3.bf16.msra.mxu1 %v2791_v24 }
 0x60e   :  { %2532 = vmatprep.subr.bf16.mxu1 %v2792_v25 }
 0x611   :  { %2533 = vmatpush3.bf16.msra.mxu1 %v2792_v25  ;;  %v2152_v25 = vld [vmem:[%s3431_s11] ss:$0 sm:$0xff] }
 0x612   :  { %2652 = vmatprep.subr.bf16.mxu1 %v2850_v33 }
 0x614   :  { %2535 = vmatmul.mubr.bf16.vlgmr.msra.gmra.mrb[20].mxu1 %v1295_v10 }
 0x61a   :  { %2654 = vmatpush3.bf16.xpose.msra.mxu1 %v3063_v9  ;;  %v1535_v9 = vpop.permute.xlu0 %1534 }
 0x61b   :  { %2655 = vmatprep.subr.bf16.mxu1 %v2850_v33 }
 0x622   :  { %2657 = vmatpush3.bf16.xpose.msra.mxu1 %v3061_v8  ;;  %v2852_v8 = vmov 0.0  }
 0x623   :  { %2658 = vmatprep.subr.bf16.mxu1 %v2850_v33  ;;  %2570 = vmatprep.mubr.msk.f32.mxu0 %vm2851_vm1, %v2852_v8 }
 0x624   :  { %2605 = vmatprep.mubr.msk.f32.mxu1 %vm2851_vm1, %v2852_v8 }
 0x62a   :  { %2660 = vmatpush3.bf16.xpose.msra.mxu1 %v3143_v61  ;;  %v1545_v61 = vpop.permute.xlu0 %1544 }
 0x62b   :  { %2661 = vmatprep.subr.bf16.mxu1 %v2850_v33 }
 0x62e   :  { %v1592_v45 = vpop.permute.xlu0 %1591 }
 0x62f   :  { %vm1593_vm2 = vcmp.eq.s32.totalorder %v1581_v44, %v1592_v45 }
 0x632   :  { %2663 = vmatpush3.bf16.xpose.msra.mxu1 %v3141_v60  ;;  %v1540_v60 = vpop.permute.xlu1 %1539 }
 0x633   :  { %2664 = vmatprep.subr.bf16.mxu1 %v2850_v33 }
 0x636   :  { %v1550_v29 = vpop.permute.xlu1 %1549 }
 0x63a   :  { %2666 = vmatpush3.bf16.xpose.msra.mxu1 %v3232_v52  ;;  %v1585_v46 = vpop.permute.xlu1 %1584  ;;  %v2799_v52 = vld [vmem:[%s3428_s8 + $0x58] sm:$0xff]  }
 0x63b   :  { %2667 = vmatprep.subr.bf16.mxu1 %v2850_v33  ;;  %vm1586_vm3 = vcmp.eq.s32.totalorder %v1581_v44, %v1585_v46 }
 0x642   :  { %2669 = vmatpush3.bf16.xpose.msra.mxu1 %v3230_v51  ;;  %v2798_v51 = vld [vmem:[%s3428_s8 + $0x10] sm:$0xff]  }
 0x643   :  { %2670 = vmatprep.subr.bf16.mxu1 %v2850_v33 }
 0x6e7   :  { %v2536_v26 = vpop.f32.mrb[20].mxu1 }
 0x6e8   :  { %v1554_v27 = vadd.f32 %v2536_v26, %v1545_v61  ;;  %v1509_v28 = vpop.f32.mrb[21].mxu1 }
 0x6e9   :  { %v1552_v30 = vadd.f32 %v1535_v9, %v1509_v28  ;;  %v2537_v31 = vpop.f32.mrb[22].mxu1 }
 0x6ea   :  { %2841 = vtanh.f32 %v1554_v27  ;;  %v1555_v32 = vadd.f32 %v2537_v31, %v1550_v29  ;;  %v1512_v34 = vpop.f32.mrb[23].mxu1 }
 0x6eb   :  { %2843 = vtanh.f32 %v1552_v30  ;;  %v1553_v35 = vadd.f32 %v1540_v60, %v1512_v34 }
 0x6ec   :  { %2845 = vtanh.f32 %v1555_v32 }
 0x6ed   :  { %2847 = vtanh.f32 %v1553_v35 }
 0x6f4   :  { %v2842_v36 = vpop.eup %2841 }
 0x6f5   :  { %v2844_v37 = vpop.eup %2843 }
 0x6f6   :  { %v2846_v38 = vpop.eup %2845 }
 0x6f7   :  { %v2848_v39 = vpop.eup %2847  ;;  %v2650_v40 = vpack.c.bf16 %v2846_v38, %v2842_v36 }
 0x6f8   :  { %v2647_v41 = vpack.c.bf16 %v2848_v39, %v2844_v37 }
 0x6fa   :  { %2648 = vmatpush3.bf16.xpose.msra.mxu0 %v2647_v41  ;;  %2672 = vmatpush3.bf16.xpose.msra.mxu1 %v2647_v41 }
 0x6fb   :  { %2649 = vmatprep.subr.bf16.mxu0 %v2850_v33  ;;  %2673 = vmatprep.subr.bf16.mxu1 %v2850_v33  ;;  %v2795_v33 = vld [vmem:[%s3428_s8 + $0x48] sm:$0xff]  }
 0x702   :  { %2651 = vmatpush3.bf16.xpose.msra.mxu0 %v2650_v40  ;;  %2675 = vmatpush3.bf16.xpose.msra.mxu1 %v2650_v40 }
 0x703   :  { %2299 = vmatprep.subr.bf16.mxu0 %v2793_v42  ;;  %2608 = vmatprep.subr.bf16.mxu1 %v2852_v8 }
 0x709   :  { %2571 = vmatmul.mubr.msk.f32.vlgmr.msra.gmra.mrb[16].mxu0 %vm1586_vm3, %v2853_v48  ;;  %2606 = vmatmul.mubr.msk.f32.vlgmr.msra.gmra.mrb[24].mxu1 %vm1593_vm2, %v2853_v48 }
 0x70a   :  { %2300 = vmatpush3.bf16.msra.mxu0 %v2794_v47  ;;  %2624 = vmatprep.mubr.msk.bf16.mxu1 %vm2851_vm1, %v2852_v8 }
 0x70b   :  { %2301 = vmatprep.subr.bf16.mxu0 %v2795_v33  ;;  %2609 = vmatpush3.bf16.msra.mxu1 %v2809_v0 }
 0x70c   :  { %2610 = vmatprep.subr.bf16.mxu1 %v2852_v8 }
 0x70e   :  { %2302 = vmatpush3.bf16.msra.mxu0 %v2796_v49 }
 0x70f   :  { %2303 = vmatprep.subr.bf16.mxu0 %v2797_v50  ;;  %2611 = vmatpush3.bf16.msra.mxu1 %v2810_v1 }
 0x710   :  { %2612 = vmatprep.subr.bf16.mxu1 %v2852_v8 }
 0x712   :  { %2304 = vmatpush3.bf16.msra.mxu0 %v2798_v51 }
 0x713   :  { %2305 = vmatprep.subr.bf16.mxu0 %v2799_v52  ;;  %2613 = vmatpush3.bf16.msra.mxu1 %v2811_v2 }
 0x714   :  { %2614 = vmatprep.subr.bf16.mxu1 %v2852_v8 }
 0x716   :  { %2306 = vmatpush3.bf16.msra.mxu0 %v2800_v53 }
 0x717   :  { %2307 = vmatprep.subr.bf16.mxu0 %v2801_v54  ;;  %2615 = vmatpush3.bf16.msra.mxu1 %v2812_v3 }
 0x718   :  { %2616 = vmatprep.subr.bf16.mxu1 %v2852_v8 }
 0x71a   :  { %2308 = vmatpush3.bf16.msra.mxu0 %v2802_v55 }
 0x71b   :  { %2309 = vmatprep.subr.bf16.mxu0 %v2803_v56  ;;  %2617 = vmatpush3.bf16.msra.mxu1 %v2813_v4 }
 0x71c   :  { %2618 = vmatprep.subr.bf16.mxu1 %v2852_v8 }
 0x71e   :  { %2310 = vmatpush3.bf16.msra.mxu0 %v2804_v57 }
 0x71f   :  { %2311 = vmatprep.subr.bf16.mxu0 %v2805_v58  ;;  %2619 = vmatpush3.bf16.msra.mxu1 %v2814_v5 }
 0x720   :  { %2620 = vmatprep.subr.bf16.mxu1 %v2852_v8 }
 0x722   :  { %2312 = vmatpush3.bf16.msra.mxu0 %v2806_v59 }
 0x723   :  { %2313 = vmatprep.subr.bf16.mxu0 %v2807_v62  ;;  %2621 = vmatpush3.bf16.msra.mxu1 %v2815_v14 }
 0x724   :  { %2622 = vmatprep.subr.bf16.mxu1 %v2852_v8 }
 0x726   :  { %2314 = vmatpush3.bf16.msra.mxu0 %v2808_v63 }
 0x727   :  { %2623 = vmatpush3.bf16.msra.mxu1 %v2816_v15 }
 0x7dc   :  { %v1662_v6 = vpop.f32.mrb[16].mxu0  ;;  %v1732_v7 = vpop.f32.mrb[24].mxu1 }
 0x7dd   :  { %v1736_v10 = vpack.c.bf16 %v1662_v6, %v1662_v6  ;;  %v1737_v11 = vpack.c.bf16 %v1732_v7, %v1732_v7  ;;  %v2572_v12 = vpop.f32.mrb[17].mxu0  ;;  %v2607_v13 = vpop.f32.mrb[25].mxu1 }
 0x7df   :  { %1905 = vmatprep.mubr.bf16.mxu0 %v1737_v11 }
 0x7e0   :  { %1906 = vmatmul.mubr.bf16.vlgmr.msra.gmra.mrb[20].mxu0 %v1736_v10 }
 0x8b3   :  { %v2315_v16 = vpop.f32.mrb[20].mxu0 }
 0x8b4   :  { %v2316_v18 = vpop.f32.mrb[21].mxu0 }
 0x8b5   :  { %v2317_v19 = vadd.f32 %v2316_v18, %v2315_v16  ;;  %v2318_v20 = vpop.f32.mrb[22].mxu0 }
 0x8b6   :  { %v2319_v21 = vpop.f32.mrb[23].mxu0 }
 0x8b7   :  { %v1908_v22 = vadd.f32 %v2317_v19, %v2135_v17 }
 0x8b9   :  { %v1913_v23 = vmax.f32 %v1908_v22, 0.0 }
 0x8bb   :  { %v1914_v24 = vpack.c.bf16 %v1913_v23, %v1913_v23 }
 0x8bd   :  { %2625 = vmatmul.mubr.bf16.vlgmr.msra.gmra.mrb[28].mxu1 %v1914_v24 }
 0x990   :  { %v2020_v8 = vpop.f32.mrb[28].mxu1 }
 0x991   :  { %v2021_v9 = vadd.f32 %v2152_v25, %v2020_v8  ;;  %v2626_v60 = vpop.f32.mrb[29].mxu1 }
 0x992   :  { %v2023_v61 = vpop.f32.mrb[30].mxu1 }
 0x993   :  { %2026 = vst [vmem:[%s3432_s12] sm:$0xff] %v2021_v9  ;;  %v2627_v26 = vpop.f32.mrb[31].mxu1 }

</bundles_post_ra>
